<compile_context>
chip_gen: v5e
topology: v5e:2x2
jax: 0.10.0
libtpu: 0.0.40
codegen_flags: <defaults>
</compile_context>

<pallas_src>
import math
from functools import partial

import jax
import jax.numpy as jnp
from jax import lax
from jax.experimental import pallas as pl
from jax.experimental.pallas import tpu as pltpu


# ----------------------------------------------------------------------------
# Helpers
# ----------------------------------------------------------------------------
def _round_up(v, m):
    return ((v + m - 1) // m) * m


def _pick_e_chunk(e_dim, ek_max):
    """Chunk size for the expert hidden dim: full e_dim, or a 128-multiple divisor."""
    if e_dim <= ek_max:
        return e_dim
    c = (ek_max // 128) * 128
    while c >= 128:
        if e_dim % c == 0:
            return c
        c -= 128
    return e_dim   # no valid divisor -> no chunking


def _erf_poly(x):
    # Abramowitz & Stegun 7.1.26, |abs err| <= 1.5e-7. Only exp/mul/add, so it
    # lowers on every TPU generation. Evaluated in f32.
    a1, a2, a3, a4, a5 = (0.254829592, -0.284496736, 1.421413741,
                          -1.453152027, 1.061405429)
    p = 0.3275911
    z = jnp.abs(x)
    t = 1.0 / (1.0 + p * z)
    poly = ((((a5 * t + a4) * t + a3) * t + a2) * t + a1) * t
    y = 1.0 - poly * jnp.exp(-z * z)
    return jnp.where(x >= 0.0, y, -y)


def _gelu_exact(x):
    # Matches PyTorch F.gelu default (erf form) to ~1e-6.
    return 0.5 * x * (1.0 + _erf_poly(x * 0.7071067811865476))


# ----------------------------------------------------------------------------
# Pallas kernels
# ----------------------------------------------------------------------------
def _router_kernel(x_ref, w_ref, o_ref):
    # x: (tm, h) f32, w: (h, Rp) f32 (pre-transposed router weight, lane-dense
    # 128-padded output). Plain NN matmul -> no in-kernel transposes.
    o_ref[...] = jnp.dot(x_ref[...], w_ref[...],
                         preferred_element_type=jnp.float32)


def _moe_expert_kernel(ids_ref, cnt_ref, x_ref, wup_ref, wdown_ref, gates_ref,
                       o_ref, acc_ref, *, n_experts):
    """Grid = (token_tiles, expert_slots, e_dim_chunks).

    ids_ref   : SMEM (ntiles*E,) int32  compacted active expert ids per tile
                (slots >= count repeat the previous id -> weight DMA deduped)
    cnt_ref   : SMEM (ntiles,)   int32  number of active slots per tile
    x_ref     : (tm, h)     token tile, compute dtype (resident across e, c)
    wup_ref   : (1, h, ek)  W_up^T chunk   (pre-transposed, compute dtype)
    wdown_ref : (1, ek, h)  W_down^T chunk (pre-transposed, compute dtype)
    gates_ref : (tm, Ep)    lane-dense f32 gate matrix (resident across e, c)
    o_ref     : (tm, h)     output tile (same block across e, c)
    acc_ref   : VMEM (tm, h) f32 accumulator scratch
    """
    t = pl.program_id(0)
    e = pl.program_id(1)
    c = pl.program_id(2)

    @pl.when((e == 0) & (c == 0))
    def _init():
        acc_ref[...] = jnp.zeros_like(acc_ref)

    # Only consume slots that hold a genuinely active expert for this tile.
    @pl.when(e < cnt_ref[t])
    def _compute():
        x = x_ref[...]                                   # (tm, h) compute dtype
        wu = wup_ref[0]                                  # (h, ek)
        wd = wdown_ref[0]                                # (ek, h)

        # up: x @ W_up^T chunk -> f32 MXU accumulation; exact GELU in f32.
        h1 = jnp.dot(x, wu, preferred_element_type=jnp.float32)   # (tm, ek)
        h1 = _gelu_exact(h1)

        # down: gelu chunk @ W_down^T chunk (sums over chunks == full product).
        y = jnp.dot(h1.astype(wd.dtype), wd,
                    preferred_element_type=jnp.float32)           # (tm, h)

        # Gate column for the ACTUAL expert id of this slot (from SMEM).
        # gates block is DMA'd once per tile; the select is VPU/XLU filler.
        eid = ids_ref[t * n_experts + e]
        col = lax.broadcasted_iota(jnp.int32, gates_ref.shape, 1)
        g = jnp.sum(jnp.where(col == eid, gates_ref[...], 0.0),
                    axis=1, keepdims=True)                         # (tm, 1) f32

        acc_ref[...] += g * y

    @pl.when((e == pl.num_programs(1) - 1) & (c == pl.num_programs(2) - 1))
    def _store():
        o_ref[...] = acc_ref[...].astype(o_ref.dtype)


# ----------------------------------------------------------------------------
# One-time parameter preparation (concat + transpose + cast, OUTSIDE forward)
# ----------------------------------------------------------------------------
def prepare_moe_params(w_up_shared, w_down_shared, w_up_routed, w_down_routed,
                       w_router, compute_dtype=jnp.bfloat16):
    """
    w_up_*   : (n, e_dim, h_dim)  nn.Linear(h, e).weight per expert
    w_down_* : (n, h_dim, e_dim)  nn.Linear(e, h).weight per expert
    w_router : (n_routed, h_dim)  nn.Linear(h, n_routed).weight
    Returns (w_up_t (E,h,e), w_down_t (E,e,h), w_router_t (h, Rp)).
    """
    ups = [w for w in (w_up_shared, w_up_routed) if w.shape[0] > 0]
    downs = [w for w in (w_down_shared, w_down_routed) if w.shape[0] > 0]
    w_up_all = jnp.concatenate(ups, axis=0)        # (E, e_dim, h_dim)
    w_down_all = jnp.concatenate(downs, axis=0)    # (E, h_dim, e_dim)
    # Pre-transpose once so in-kernel dots are NN matmuls (no XLU transposes).
    w_up_t = jnp.transpose(w_up_all, (0, 2, 1)).astype(compute_dtype)     # (E, h, e)
    w_down_t = jnp.transpose(w_down_all, (0, 2, 1)).astype(compute_dtype) # (E, e, h)

    n_routed, h_dim = w_router.shape
    Rp = _round_up(max(n_routed, 1), 128)
    w_router_t = jnp.zeros((h_dim, Rp), jnp.float32).at[:, :n_routed].set(
        w_router.astype(jnp.float32).T)
    return w_up_t, w_down_t, w_router_t


# ----------------------------------------------------------------------------
# MoE forward
# ----------------------------------------------------------------------------
def moe_forward(x, w_up_t, w_down_t, w_router_t, n_shared, n_routed, k, *,
                tm_max=256, ek_max=512):
    """
    x : (B, T, h_dim); weights from prepare_moe_params.
    returns (out (B, T, h_dim), aux_loss scalar)
    """
    B, T, h_dim = x.shape
    E = n_shared + n_routed
    e_dim = w_up_t.shape[2]
    N = B * T
    out_dtype = x.dtype
    compute_dtype = w_up_t.dtype

    x2 = x.reshape(N, h_dim)
    tm = min(tm_max, _round_up(N, 8))
    Npad = _round_up(N, tm)
    ntiles = Npad // tm
    x_pad = jnp.zeros((Npad, h_dim), out_dtype).at[:N].set(x2)

    # --- router: tiny matmul, kept in f32 (routing decisions stay exact) ----
    Rp = w_router_t.shape[1]
    logits_pad = pl.pallas_call(
        _router_kernel,
        out_shape=jax.ShapeDtypeStruct((Npad, Rp), jnp.float32),
        grid=(ntiles,),
        in_specs=[
            pl.BlockSpec((tm, h_dim), lambda t: (t, 0)),
            pl.BlockSpec((h_dim, Rp), lambda t: (0, 0)),
        ],
        out_specs=pl.BlockSpec((tm, Rp), lambda t: (t, 0)),
        compiler_params=pltpu.CompilerParams(
            dimension_semantics=("parallel",)),
    )(x_pad.astype(jnp.float32), w_router_t)
    logits = logits_pad[:N, :n_routed]

    # --- routing glue (softmax / top-k / scatter) in plain JAX --------------
    probs = jax.nn.softmax(logits, axis=-1)
    top_p, top_i = lax.top_k(probs, k)                      # (N, k) each

    oh = jax.nn.one_hot(top_i, n_routed, dtype=jnp.float32)  # (N, k, n_routed)
    expert_counts = jnp.sum(oh, axis=(0, 1))
    aux_loss = jnp.var(expert_counts, ddof=1) * 1e-7          # torch .var() is unbiased

    # Lane-dense per-token gate matrix: shared experts gate 1, routed = top-k prob.
    Ep = _round_up(E, 128)
    gates = jnp.zeros((Npad, Ep), jnp.float32)
    if n_shared > 0:
        gates = gates.at[:, :n_shared].set(1.0)
    rows = jnp.arange(N)[:, None]
    gates = gates.at[rows, n_shared + top_i].add(top_p.astype(jnp.float32))

    # Per-tile compacted active expert list + count (drives weight DMA skip).
    sel = jnp.zeros((Npad, n_routed), jnp.bool_).at[:N].set(jnp.sum(oh, axis=1) > 0.0)
    routed_active = sel.reshape(ntiles, tm, n_routed).any(axis=1)   # (ntiles, n_routed)
    n_active_routed = routed_active.sum(axis=1).astype(jnp.int32)
    tile_counts = (n_shared + n_active_routed).astype(jnp.int32)    # (ntiles,)

    order = jnp.argsort(jnp.logical_not(routed_active).astype(jnp.int32),
                        axis=1, stable=True)                        # active experts first
    routed_ids = (order + n_shared).astype(jnp.int32)               # global ids
    shared_ids = jnp.broadcast_to(jnp.arange(n_shared, dtype=jnp.int32),
                                  (ntiles, n_shared))
    expert_ids = jnp.concatenate([shared_ids, routed_ids], axis=1)  # (ntiles, E)
    last_ids = jnp.take_along_axis(
        expert_ids, jnp.clip(tile_counts - 1, 0, E - 1)[:, None], axis=1)
    slot = jnp.arange(E, dtype=jnp.int32)[None, :]
    # Inactive slots repeat the previous active id -> consecutive identical
    # block indices -> Pallas skips the weight DMA for them.
    expert_ids = jnp.where(slot < tile_counts[:, None], expert_ids, last_ids)
    expert_ids_flat = expert_ids.reshape(-1).astype(jnp.int32)       # 1-D SMEM

    # --- fused expert kernel (shared + routed, accumulating pass) -----------
    ek = _pick_e_chunk(e_dim, ek_max)
    nchunks = e_dim // ek

    cb = jnp.dtype(compute_dtype).itemsize
    ob = jnp.dtype(out_dtype).itemsize
    vmem_est = (2 * tm * h_dim * cb            # x (double-buffered)
                + 2 * h_dim * ek * cb          # W_up^T chunk
                + 2 * ek * h_dim * cb          # W_down^T chunk
                + 2 * tm * Ep * 4              # gates block
                + 2 * tm * h_dim * ob          # output block
                + tm * h_dim * 4               # f32 accumulator scratch
                + tm * ek * 4)                 # f32 hidden intermediate
    vmem_limit = int(min(128 * 1024 * 1024, max(2 * vmem_est, 32 * 1024 * 1024)))

    kernel = partial(_moe_expert_kernel, n_experts=E)

    out_pad = pl.pallas_call(
        kernel,
        out_shape=jax.ShapeDtypeStruct((Npad, h_dim), out_dtype),
        grid_spec=pltpu.PrefetchScalarGridSpec(
            num_scalar_prefetch=2,
            grid=(ntiles, E, nchunks),
            in_specs=[
                pl.BlockSpec((tm, h_dim),
                             lambda t, e, c, ids_s, cnt_s: (t, 0)),
                pl.BlockSpec((1, h_dim, ek),
                             lambda t, e, c, ids_s, cnt_s: (ids_s[t * E + e], 0, c)),
                pl.BlockSpec((1, ek, h_dim),
                             lambda t, e, c, ids_s, cnt_s: (ids_s[t * E + e], c, 0)),
                pl.BlockSpec((tm, Ep),
                             lambda t, e, c, ids_s, cnt_s: (t, 0)),
            ],
            out_specs=pl.BlockSpec((tm, h_dim),
                                   lambda t, e, c, ids_s, cnt_s: (t, 0)),
            scratch_shapes=[pltpu.VMEM((tm, h_dim), jnp.float32)],
        ),
        compiler_params=pltpu.CompilerParams(
            dimension_semantics=("parallel", "arbitrary", "arbitrary"),
            vmem_limit_bytes=vmem_limit),
    )(expert_ids_flat, tile_counts, x_pad.astype(compute_dtype),
      w_up_t, w_down_t, gates)

    out = out_pad[:N].reshape(B, T, h_dim)
    return out, aux_loss


# ----------------------------------------------------------------------------
# Pure-JAX reference (mirrors PyTorch MoE.forward semantics)
# ----------------------------------------------------------------------------
def _reference(x, w_up_shared, w_down_shared, w_up_routed, w_down_routed,
               w_router, k):
    def expert(xx, wu, wd):
        h = xx @ wu.T
        h = jax.nn.gelu(h, approximate=False)   # exact erf GELU == F.gelu
        return h @ wd.T

    n_shared = w_up_shared.shape[0]
    n_routed = w_up_routed.shape[0]

    shared = jnp.zeros_like(x)
    for i in range(n_shared):
        shared = shared + expert(x, w_up_shared[i], w_down_shared[i])

    logits = x @ w_router.T
    probs = jax.nn.softmax(logits, axis=-1)
    top_p, top_i = lax.top_k(probs, k)

    routed = jnp.zeros_like(x)
    for kk in range(k):
        for e in range(n_routed):
            mask = (top_i[..., kk] == e)[..., None]
            eo = expert(x, w_up_routed[e], w_down_routed[e])
            routed = routed + jnp.where(mask, eo * top_p[..., kk][..., None], 0.0)
    return shared + routed


if __name__ == "__main__":
    B, T, h_dim, e_dim = 2, 8, 32, 64
    n_shared, n_routed, k = 1, 4, 2

    key = jax.random.PRNGKey(0)
    ks = jax.random.split(key, 6)
    x = jax.random.normal(ks[0], (B, T, h_dim), dtype=jnp.float32)

    bound_h = 1.0 / math.sqrt(h_dim)
    bound_e = 1.0 / math.sqrt(e_dim)
    w_up_s = jax.random.uniform(ks[1], (n_shared, e_dim, h_dim), jnp.float32,
                                -bound_h, bound_h)
    w_down_s = jax.random.uniform(ks[2], (n_shared, h_dim, e_dim), jnp.float32,
                                  -bound_e, bound_e)
    w_up_r = jax.random.uniform(ks[3], (n_routed, e_dim, h_dim), jnp.float32,
                                -bound_h, bound_h)
    w_down_r = jax.random.uniform(ks[4], (n_routed, h_dim, e_dim), jnp.float32,
                                  -bound_e, bound_e)
    w_router = jax.random.uniform(ks[5], (n_routed, h_dim), jnp.float32,
                                  -bound_h, bound_h)

    ref = _reference(x, w_up_s, w_down_s, w_up_r, w_down_r, w_router, k)

    fwd = jax.jit(lambda xx, wu, wd, wr: moe_forward(
        xx, wu, wd, wr, n_shared, n_routed, k))

    # f32 compute path: strict correctness check against the reference.
    p32 = prepare_moe_params(w_up_s, w_down_s, w_up_r, w_down_r, w_router,
                             compute_dtype=jnp.float32)
    out32, aux = fwd(x, *p32)
    out32 = jax.block_until_ready(out32)
    assert out32.shape == (B, T, h_dim)
    assert bool(jnp.isfinite(aux)), "aux loss not finite"
    assert jnp.allclose(out32, ref, atol=1e-4, rtol=1e-4), (
        float(jnp.max(jnp.abs(out32 - ref))))

    # bf16 compute path (production perf config): looser numerical check.
    pbf = prepare_moe_params(w_up_s, w_down_s, w_up_r, w_down_r, w_router,
                             compute_dtype=jnp.bfloat16)
    outbf, auxbf = fwd(x, *pbf)
    outbf = jax.block_until_ready(outbf)
    assert bool(jnp.all(jnp.isfinite(outbf)))
    assert jnp.allclose(outbf, ref, atol=6e-2, rtol=6e-2), (
        float(jnp.max(jnp.abs(outbf - ref))))

    print("KERNEL_OK")
</pallas_src>

<mosaic_0001>
module attributes {stable_mosaic.version = 11 : i64} {
  func.func @_router_kernel(%arg0: i32, %arg1: memref<16x32xf32, #tpu.memory_space<vmem>>, %arg2: memref<32x128xf32, #tpu.memory_space<vmem>>, %arg3: memref<16x128xf32, #tpu.memory_space<vmem>>) attributes {dimension_semantics = [#tpu.dimension_semantics<parallel>], iteration_bounds = array<i64: 1>, scalar_prefetch = 0 : i64, scratch_operands = 0 : i64, tpu.core_type = #tpu.core_type<tc>, window_params = [{transform_indices = @transform_0, window_bounds = array<i64: 16, 32>}, {pipeline_mode = #tpu.pipeline_mode<synchronous>, transform_indices = @transform_1, window_bounds = array<i64: 32, 128>}, {transform_indices = @transform_2, window_bounds = array<i64: 16, 128>}]} {
    %c0 = arith.constant 0 : index
    %c0_0 = arith.constant 0 : index
    %0 = vector.load %arg1[%c0, %c0_0] : memref<16x32xf32, #tpu.memory_space<vmem>>, vector<16x32xf32>
    %c0_1 = arith.constant 0 : index
    %c0_2 = arith.constant 0 : index
    %1 = vector.load %arg2[%c0_1, %c0_2] : memref<32x128xf32, #tpu.memory_space<vmem>>, vector<32x128xf32>
    %cst = arith.constant dense<0.000000e+00> : vector<16x128xf32>
    %2 = tpu.matmul %0, %1, %cst {dimension_numbers = #tpu.dot_dimension_numbers<[1], [0], [0], [1], [0, 0, 1, 1], [], []>} : vector<16x32xf32>, vector<32x128xf32>, vector<16x128xf32> -> vector<16x128xf32>
    %c0_3 = arith.constant 0 : index
    %c0_4 = arith.constant 0 : index
    %3 = vector.load %arg3[%c0_3, %c0_4] : memref<16x128xf32, #tpu.memory_space<vmem>>, vector<16x128xf32>
    tpu.vector_store %arg3[%c0_3, %c0_4], %2 {strides = array<i32>} : memref<16x128xf32, #tpu.memory_space<vmem>>, vector<16x128xf32>,
    return
  }
  func.func @transform_0(%arg0: i32) -> (i32, i32) {
    %c0_i32 = arith.constant 0 : i32
    %c0_i32_0 = arith.constant 0 : i32
    return %arg0, %c0_i32 : i32, i32
  }
  func.func @transform_1(%arg0: i32) -> (i32, i32) {
    %c0_i32 = arith.constant 0 : i32
    %c0_i32_0 = arith.constant 0 : i32
    %c0_i32_1 = arith.constant 0 : i32
    return %c0_i32, %c0_i32_0 : i32, i32
  }
  func.func @transform_2(%arg0: i32) -> (i32, i32) {
    %c0_i32 = arith.constant 0 : i32
    %c0_i32_0 = arith.constant 0 : i32
    return %arg0, %c0_i32 : i32, i32
  }
}

module attributes {stable_mosaic.version = 11 : i64} {
  func.func @_moe_expert_kernel(%arg0: i32, %arg1: i32, %arg2: i32, %arg3: memref<5xi32, #tpu.memory_space<smem>>, %arg4: memref<1xi32, #tpu.memory_space<smem>>, %arg5: memref<16x32xf32, #tpu.memory_space<vmem>>, %arg6: memref<1x32x64xf32, #tpu.memory_space<vmem>>, %arg7: memref<1x64x32xf32, #tpu.memory_space<vmem>>, %arg8: memref<16x128xf32, #tpu.memory_space<vmem>>, %arg9: memref<16x32xf32, #tpu.memory_space<vmem>>, %arg10: memref<16x32xf32, #tpu.memory_space<vmem>>) attributes {dimension_semantics = [#tpu.dimension_semantics<parallel>, #tpu.dimension_semantics<arbitrary>, #tpu.dimension_semantics<arbitrary>], iteration_bounds = array<i64: 1, 5, 1>, scalar_prefetch = 2 : i64, scratch_operands = 1 : i64, tpu.core_type = #tpu.core_type<tc>, window_params = [{transform_indices = @transform_0, window_bounds = array<i64: 16, 32>}, {transform_indices = @transform_1, window_bounds = array<i64: 1, 32, 64>}, {transform_indices = @transform_2, window_bounds = array<i64: 1, 64, 32>}, {transform_indices = @transform_3, window_bounds = array<i64: 16, 128>}, {transform_indices = @transform_4, window_bounds = array<i64: 16, 32>}]} {
    %c0_i32 = arith.constant 0 : i32
    %0 = arith.cmpi eq, %arg1, %c0_i32 : i32
    %c0_i32_0 = arith.constant 0 : i32
    %1 = arith.cmpi eq, %arg2, %c0_i32_0 : i32
    %2 = arith.andi %0, %1 : i1
    %3 = arith.extui %2 : i1 to i32
    %c0_i32_1 = arith.constant 0 : i32
    %4 = arith.cmpi ne, %3, %c0_i32_1 : i32
    scf.if %4 {
      %cst = arith.constant 0.000000e+00 : f32
      %15 = vector.broadcast %cst : f32 to vector<16x32xf32>
      %c0 = arith.constant 0 : index
      %c0_5 = arith.constant 0 : index
      %16 = vector.load %arg10[%c0, %c0_5] : memref<16x32xf32, #tpu.memory_space<vmem>>, vector<16x32xf32>
      tpu.vector_store %arg10[%c0, %c0_5], %15 {strides = array<i32>} : memref<16x32xf32, #tpu.memory_space<vmem>>, vector<16x32xf32>,
    } else {
    }
    %5 = arith.index_cast %arg0 : i32 to index
    %6 = memref.load %arg4[%5] : memref<1xi32, #tpu.memory_space<smem>>
    %7 = arith.cmpi slt, %arg1, %6 : i32
    %8 = arith.extui %7 : i1 to i32
    %c0_i32_2 = arith.constant 0 : i32
    %9 = arith.cmpi ne, %8, %c0_i32_2 : i32
    scf.if %9 {
      %c0 = arith.constant 0 : index
      %c0_5 = arith.constant 0 : index
      %15 = vector.load %arg5[%c0, %c0_5] : memref<16x32xf32, #tpu.memory_space<vmem>>, vector<16x32xf32>
      %c0_6 = arith.constant 0 : index
      %c0_7 = arith.constant 0 : index
      %c0_8 = arith.constant 0 : index
      %16 = vector.load %arg6[%c0_6, %c0_7, %c0_8] : memref<1x32x64xf32, #tpu.memory_space<vmem>>, vector<1x32x64xf32>
      %17 = vector.shape_cast %16 : vector<1x32x64xf32> to vector<32x64xf32>
      %c0_9 = arith.constant 0 : index
      %c0_10 = arith.constant 0 : index
      %c0_11 = arith.constant 0 : index
      %18 = vector.load %arg7[%c0_9, %c0_10, %c0_11] : memref<1x64x32xf32, #tpu.memory_space<vmem>>, vector<1x64x32xf32>
      %19 = vector.shape_cast %18 : vector<1x64x32xf32> to vector<64x32xf32>
      %cst = arith.constant dense<0.000000e+00> : vector<16x64xf32>
      %20 = tpu.matmul %15, %17, %cst {dimension_numbers = #tpu.dot_dimension_numbers<[1], [0], [0], [1], [0, 0, 1, 1], [], []>} : vector<16x32xf32>, vector<32x64xf32>, vector<16x64xf32> -> vector<16x64xf32>
      %cst_12 = arith.constant 5.000000e-01 : f32
      %21 = vector.broadcast %cst_12 : f32 to vector<16x64xf32>
      %22 = arith.mulf %21, %20 : vector<16x64xf32>
      %cst_13 = arith.constant 0.707106769 : f32
      %23 = vector.broadcast %cst_13 : f32 to vector<16x64xf32>
      %24 = arith.mulf %20, %23 : vector<16x64xf32>
      %25 = math.absf %24 : vector<16x64xf32>
      %cst_14 = arith.constant 0.327591091 : f32
      %26 = vector.broadcast %cst_14 : f32 to vector<16x64xf32>
      %27 = arith.mulf %26, %25 : vector<16x64xf32>
      %cst_15 = arith.constant 1.000000e+00 : f32
      %28 = vector.broadcast %cst_15 : f32 to vector<16x64xf32>
      %29 = arith.addf %28, %27 : vector<16x64xf32>
      %cst_16 = arith.constant 1.000000e+00 : f32
      %30 = vector.broadcast %cst_16 : f32 to vector<16x64xf32>
      %31 = arith.divf %30, %29 : vector<16x64xf32>
      %cst_17 = arith.constant 1.06140542 : f32
      %32 = vector.broadcast %cst_17 : f32 to vector<16x64xf32>
      %33 = arith.mulf %32, %31 : vector<16x64xf32>
      %cst_18 = arith.constant -1.45315206 : f32
      %34 = vector.broadcast %cst_18 : f32 to vector<16x64xf32>
      %35 = arith.addf %33, %34 : vector<16x64xf32>
      %36 = arith.mulf %35, %31 : vector<16x64xf32>
      %cst_19 = arith.constant 1.42141378 : f32
      %37 = vector.broadcast %cst_19 : f32 to vector<16x64xf32>
      %38 = arith.addf %36, %37 : vector<16x64xf32>
      %39 = arith.mulf %38, %31 : vector<16x64xf32>
      %cst_20 = arith.constant -0.284496725 : f32
      %40 = vector.broadcast %cst_20 : f32 to vector<16x64xf32>
      %41 = arith.addf %39, %40 : vector<16x64xf32>
      %42 = arith.mulf %41, %31 : vector<16x64xf32>
      %cst_21 = arith.constant 0.254829586 : f32
      %43 = vector.broadcast %cst_21 : f32 to vector<16x64xf32>
      %44 = arith.addf %42, %43 : vector<16x64xf32>
      %45 = arith.mulf %44, %31 : vector<16x64xf32>
      %cst_22 = arith.constant 0.000000e+00 : f32
      %46 = vector.broadcast %cst_22 : f32 to vector<16x64xf32>
      %47 = arith.subf %46, %25 : vector<16x64xf32>
      %48 = arith.mulf %47, %25 : vector<16x64xf32>
      %49 = math.exp %48 : vector<16x64xf32>
      %50 = arith.mulf %45, %49 : vector<16x64xf32>
      %cst_23 = arith.constant 1.000000e+00 : f32
      %51 = vector.broadcast %cst_23 : f32 to vector<16x64xf32>
      %52 = arith.subf %51, %50 : vector<16x64xf32>
      %cst_24 = arith.constant 0.000000e+00 : f32
      %53 = vector.broadcast %cst_24 : f32 to vector<16x64xf32>
      %54 = arith.cmpf oge, %24, %53 : vector<16x64xf32>
      %cst_25 = arith.constant 0.000000e+00 : f32
      %55 = vector.broadcast %cst_25 : f32 to vector<16x64xf32>
      %56 = arith.subf %55, %52 : vector<16x64xf32>
      %57 = arith.select %54, %52, %56 : vector<16x64xi1>, vector<16x64xf32>
      %cst_26 = arith.constant 1.000000e+00 : f32
      %58 = vector.broadcast %cst_26 : f32 to vector<16x64xf32>
      %59 = arith.addf %58, %57 : vector<16x64xf32>
      %60 = arith.mulf %22, %59 : vector<16x64xf32>
      %cst_27 = arith.constant dense<0.000000e+00> : vector<16x32xf32>
      %61 = tpu.matmul %60, %19, %cst_27 {dimension_numbers = #tpu.dot_dimension_numbers<[1], [0], [0], [1], [0, 0, 1, 1], [], []>} : vector<16x64xf32>, vector<64x32xf32>, vector<16x32xf32> -> vector<16x32xf32>
      %c5_i32 = arith.constant 5 : i32
      %62 = arith.muli %arg0, %c5_i32 : i32
      %63 = arith.addi %62, %arg1 : i32
      %64 = arith.index_cast %63 : i32 to index
      %65 = memref.load %arg3[%64] : memref<5xi32, #tpu.memory_space<smem>>
      %66 = tpu.iota {dimensions = array<i32: 1>} : vector<16x128xi32>
      %67 = vector.broadcast %65 : i32 to vector<16x128xi32>
      %68 = arith.cmpi eq, %66, %67 : vector<16x128xi32>
      %c0_28 = arith.constant 0 : index
      %c0_29 = arith.constant 0 : index
      %69 = vector.load %arg8[%c0_28, %c0_29] : memref<16x128xf32, #tpu.memory_space<vmem>>, vector<16x128xf32>
      %cst_30 = arith.constant 0.000000e+00 : f32
      %70 = vector.broadcast %cst_30 : f32 to vector<16x128xf32>
      %71 = arith.select %68, %69, %70 : vector<16x128xi1>, vector<16x128xf32>
      %cst_31 = arith.constant dense<0.000000e+00> : vector<16xf32>
      %72 = vector.multi_reduction <add>, %71, %cst_31 [1] : vector<16x128xf32> to vector<16xf32>
      %73 = vector.shape_cast %72 : vector<16xf32> to vector<16x1xf32>
      %c0_32 = arith.constant 0 : index
      %c0_33 = arith.constant 0 : index
      %74 = vector.load %arg10[%c0_32, %c0_33] : memref<16x32xf32, #tpu.memory_space<vmem>>, vector<16x32xf32>
      %75 = vector.broadcast %73 : vector<16x1xf32> to vector<16x32xf32>
      %76 = arith.mulf %75, %61 : vector<16x32xf32>
      %77 = arith.addf %74, %76 : vector<16x32xf32>
      %c0_34 = arith.constant 0 : index
      %c0_35 = arith.constant 0 : index
      %78 = vector.load %arg10[%c0_34, %c0_35] : memref<16x32xf32, #tpu.memory_space<vmem>>, vector<16x32xf32>
      tpu.vector_store %arg10[%c0_34, %c0_35], %77 {strides = array<i32>} : memref<16x32xf32, #tpu.memory_space<vmem>>, vector<16x32xf32>,
    } else {
    }
    %c4_i32 = arith.constant 4 : i32
    %10 = arith.cmpi eq, %arg1, %c4_i32 : i32
    %c0_i32_3 = arith.constant 0 : i32
    %11 = arith.cmpi eq, %arg2, %c0_i32_3 : i32
    %12 = arith.andi %10, %11 : i1
    %13 = arith.extui %12 : i1 to i32
    %c0_i32_4 = arith.constant 0 : i32
    %14 = arith.cmpi ne, %13, %c0_i32_4 : i32
    scf.if %14 {
      %c0 = arith.constant 0 : index
      %c0_5 = arith.constant 0 : index
      %15 = vector.load %arg10[%c0, %c0_5] : memref<16x32xf32, #tpu.memory_space<vmem>>, vector<16x32xf32>
      %c0_6 = arith.constant 0 : index
      %c0_7 = arith.constant 0 : index
      %16 = vector.load %arg9[%c0_6, %c0_7] : memref<16x32xf32, #tpu.memory_space<vmem>>, vector<16x32xf32>
      tpu.vector_store %arg9[%c0_6, %c0_7], %15 {strides = array<i32>} : memref<16x32xf32, #tpu.memory_space<vmem>>, vector<16x32xf32>,
    } else {
    }
    return
  }
  func.func @transform_0(%arg0: i32, %arg1: i32, %arg2: i32, %arg3: memref<5xi32, #tpu.memory_space<smem>>, %arg4: memref<1xi32, #tpu.memory_space<smem>>) -> (i32, i32) {
    %c0_i32 = arith.constant 0 : i32
    %c0_i32_0 = arith.constant 0 : i32
    return %arg0, %c0_i32 : i32, i32
  }
  func.func @transform_1(%arg0: i32, %arg1: i32, %arg2: i32, %arg3: memref<5xi32, #tpu.memory_space<smem>>, %arg4: memref<1xi32, #tpu.memory_space<smem>>) -> (i32, i32, i32) {
    %c5_i32 = arith.constant 5 : i32
    %0 = arith.muli %arg0, %c5_i32 : i32
    %1 = arith.addi %0, %arg1 : i32
    %2 = arith.index_cast %1 : i32 to index
    %3 = memref.load %arg3[%2] : memref<5xi32, #tpu.memory_space<smem>>
    %c0_i32 = arith.constant 0 : i32
    %c0_i32_0 = arith.constant 0 : i32
    return %3, %c0_i32, %arg2 : i32, i32, i32
  }
  func.func @transform_2(%arg0: i32, %arg1: i32, %arg2: i32, %arg3: memref<5xi32, #tpu.memory_space<smem>>, %arg4: memref<1xi32, #tpu.memory_space<smem>>) -> (i32, i32, i32) {
    %c5_i32 = arith.constant 5 : i32
    %0 = arith.muli %arg0, %c5_i32 : i32
    %1 = arith.addi %0, %arg1 : i32
    %2 = arith.index_cast %1 : i32 to index
    %3 = memref.load %arg3[%2] : memref<5xi32, #tpu.memory_space<smem>>
    %c0_i32 = arith.constant 0 : i32
    %c0_i32_0 = arith.constant 0 : i32
    return %3, %arg2, %c0_i32 : i32, i32, i32
  }
  func.func @transform_3(%arg0: i32, %arg1: i32, %arg2: i32, %arg3: memref<5xi32, #tpu.memory_space<smem>>, %arg4: memref<1xi32, #tpu.memory_space<smem>>) -> (i32, i32) {
    %c0_i32 = arith.constant 0 : i32
    %c0_i32_0 = arith.constant 0 : i32
    return %arg0, %c0_i32 : i32, i32
  }
  func.func @transform_4(%arg0: i32, %arg1: i32, %arg2: i32, %arg3: memref<5xi32, #tpu.memory_space<smem>>, %arg4: memref<1xi32, #tpu.memory_space<smem>>) -> (i32, i32) {
    %c0_i32 = arith.constant 0 : i32
    %c0_i32_0 = arith.constant 0 : i32
    return %arg0, %c0_i32 : i32, i32
  }
}

</mosaic_0001>

<bundles_post_ra>
// kernel: _lambda_.2
= control target key start
LH: loop header
LB: loop body
LE: loop exit
PB: predicated region body
PF: predicated region fallthrough
CT: control target
= control target key end

     0   :  { %7 = vsyncpa [#allocation3], 0  ;;  %s105_s12 = smov [#allocation2]   ;;  %s106_s14 = smov 128   ;;  %s144_s0 = inlined_call_operand.hbm [shape: f32[16,32], index: 0, kind: input, shape index: {}]   ;;  %s145_s1 = inlined_call_operand.vmem [shape: f32[32,128], index: 1, kind: input, shape index: {}]   ;;  %s146_s2 = inlined_call_operand.vmem [shape: f32[16,128], index: 2, kind: output, shape index: {}]  }
   0x1   :  { %s12_s11 = sshll.u32 %s144_s0, 4  ;;  %s14_s13 = sshll.u32 %s105_s12, 4  ;;  %s13_s11 = int_to_ptr.hbm [resolvable:$true] %s12_s11  ;;  %s15_s13 = int_to_ptr.vmem [resolvable:$true] %s14_s13 }
   0x2   :  { %s107_s15 = smov 8  }
   0x3   :  { %20 = dma.hbm_to_vmem [thread:$0]  %s13_s11, 256, %s15_s13, [#allocation3], %s106_s14, %s106_s14, %s107_s15  }
   0x4   :  { %103 = dma.done.wait [#allocation3], 256  }
   0x5   :  { %104 = vsyncadd [#allocation3], 4294967040  ;;  %v32_v0 = vld [vmem:[%s145_s1 + $0x18] sm:$0xff]  ;;  %v31_v1 = vld [vmem:[%s145_s1 + $0x10] sm:$0xff]  ;;  %vm33_vm0 = vcmask 261120  }
   0x6   :  { %52 = vmatpush.msra.mxu0 %v32_v0  ;;  %72 = vmatpush.msra.mxu1 %v32_v0  ;;  %v30_v2 = vld [vmem:[%s145_s1 + $0x8] sm:$0xff]  ;;  %v29_v3 = vld [vmem:[%s145_s1] sm:$0xff] }
   0x7   :  { %v27_v4 = vld [vmem:[#allocation2] sm:$0xff]  ;;  %v28_v5 = vld [vmem:[#allocation2 + $0x8] sm:$0xff] }
   0x8   :  { %53 = vmatpush.msra.mxu0 %v31_v1  ;;  %73 = vmatpush.msra.mxu1 %v31_v1 }
   0xa   :  { %54 = vmatpush.msra.mxu0 %v30_v2  ;;  %74 = vmatpush.msra.mxu1 %v30_v2 }
   0xc   :  { %55 = vmatpush.msra.mxu0 %v29_v3  ;;  %75 = vmatpush.msra.mxu1 %v29_v3 }
   0xd   :  { %70 = vmatmul.msk.f32.vlgmr.msra.gmra.mxu0 %vm33_vm0, %v27_v4  ;;  %71 = vmatmul.msk.f32.vlgmr.msra.gmra.mxu1 %vm33_vm0, %v28_v5 }
  0x8a   :  { %v57_v6 = vpop.f32.mrf.mxu0  ;;  %v60_v7 = vpop.f32.mrf.mxu1 }
  0x8b   :  { %63 = vst [vmem:[%s146_s2] sm:$0xff] %v57_v6 }
  0x8c   :  { %64 = vst [vmem:[%s146_s2 + $0x8] sm:$0xff] %v60_v7 }
  0x8d   :  { %69 = vsyncpa [#allocation3], 1 }

// kernel: _lambda_.3
= control target key start
LH: loop header
LB: loop body
LE: loop exit
PB: predicated region body
PF: predicated region fallthrough
CT: control target
= control target key end

     0   :  { %s825_s26 = smov [#allocation4]   ;;  %s976_s0 = inlined_call_operand.vmem [shape: s32[5], index: 0, kind: input, shape index: {}]   ;;  %s977_s1 = inlined_call_operand.<no memory space> [shape: s32[1], index: 1, kind: input, shape index: {}]   ;;  %s978_s2 = inlined_call_operand.vmem [shape: f32[16,32], index: 2, kind: input, shape index: {}]   ;;  %s979_s3 = inlined_call_operand.vmem [shape: f32[5,32,64], index: 3, kind: input, shape index: {}]   ;;  %s980_s4 = inlined_call_operand.vmem [shape: f32[5,64,32], index: 4, kind: input, shape index: {}]   ;;  %s981_s5 = inlined_call_operand.vmem [shape: f32[16,128], index: 5, kind: input, shape index: {}]   ;;  %s982_s6 = inlined_call_operand.hbm [shape: f32[16,32], index: 6, kind: output, shape index: {}]  }
   0x1   :  { %s12_s23 = sshll.u32 %s976_s0, 4  ;;  %16 = sst [smem:[#allocation5]] %s977_s1  ;;  %s13_s23 = int_to_ptr.vmem [resolvable:$true] %s12_s23 }
   0x2   :  { %15 = dma.vmem_to_smem %s13_s23, 16, %s825_s26, [#allocation3] }
   0x3   :  { %807 = dma.done.wait [#allocation3], 16 }
   0x4   :  { %808 = vsyncadd [#allocation3], 4294967280 }
   0x5   :  { %19 = sfence }
   0x6   :  { %20 = vsyncpa [#allocation7], 0  ;;  %s871_s27 = smov 0   ;;  %s873_s28 = smov 0  }
   0x7   :  { %s875_s29 = smov 0  }
   0x8 LB: > { %s675_s0 = sadd.s32 4294967295, %s823_s29   ;;  %s41_s1 = sadd.s32 1, %s819_s28  ;;  %s823_s29 = sphi %s875_s29, %s26_s29   ;;  %s819_s28 = sphi %s873_s28, %s986_s28   ;;  %s815_s27 = sphi %s871_s27, %s985_s27  }
   0x9   : > { %p43_p0 = scmp.ge.s32.totalorder %s41_s1, 5  ;;  %p680_p1 = scmp.ge.s32.totalorder %s823_s29, 1 }
   0xa   : > { %p261_p2 = scmp.lt.s32.totalorder %s823_s29, 6 }
   0xb   : > { %s988_s1 = smov (%p43_p0, %s41_s1), 0 }
   0xc   : > { %p262_p3 = pnand %p680_p1, %p261_p2 }
   0xd   : > { %s318_s30 = sld [smem:[#allocation4 + %s815_s27]] (!%p262_p3)  ;;  %p353_p4 = scmp.eq.s32.totalorder (!%p262_p3), %s815_s27, 0 }
   0xe   : > { %265 = sbr.rel (%p262_p3) target bundleno = 383 (0x17f), region = 36  ;;  %s332_s7 = sld [smem:[#allocation4 + %s815_s27]] (!%p262_p3) }
  0x13   : > { %p319_p5 = scmp.lt.s32.totalorder %s318_s30, 4  ;;  %vm359_vm0 = vcmask (%p353_p4), 261120   ;;  %v826_v0 = vmov (%p353_p4), 0.0  }
  0x14   : > { %p334_p6 = scmp.lt.s32.totalorder %s332_s7, 4  ;;  %358 = sbr.rel (!%p353_p4) target bundleno = 25 (0x19), region = 40  ;;  %360 = vst.msk [vmem:[#allocation2] sm:$0xff] (%p353_p4), %vm359_vm0, %v826_v0 }
  0x15   : > { %s990_s30 = smov (!%p319_p5, %s318_s30), 4  ;;  %361 = vst.msk [vmem:[#allocation2 + $0x8] sm:$0xff] (%p353_p4), %vm359_vm0, %v826_v0 }
  0x16   : > { %s992_s7 = smov (!%p334_p6, %s332_s7), 4  ;;  %s696_s8 = sshll.u32 %s990_s30, 5 }
  0x17   : > { %s326_s11 = scalar_lea.vmem %s979_s3, %s696_s8  ;;  %s697_s12 = sshll.u32 %s992_s7, 6 }
  0x18   : > { %s901_s15 = scalar_lea.vmem %s980_s4, %s697_s12 }
  0x19 PF: > { %s362_s16 = sld [smem:[#allocation5]] }
  0x1f   : > { %p686_p7 = scmp.ge.s32.totalorder %s815_s27, %s362_s16 }
  0x20   : > { %s935_s21 = sld [smem:[#allocation4 + %s815_s27]] (!%p686_p7) }
  0x21   : > { %366 = sbr.rel (%p686_p7) target bundleno = 369 (0x171), region = 44 }
  0x26   : > { %v372_v1 = vld [vmem:[%s326_s11 + $0x18] sm:$0xff]  ;;  %v371_v2 = vld [vmem:[%s326_s11 + $0x10] sm:$0xff]  ;;  %v370_v3 = vld [vmem:[%s326_s11 + $0x8] sm:$0xff]  ;;  %vm381_vm1 = vcmask 261120   ;;  %v524_v46 = vlaneseq  ;;  %v526_v49 = vstv %s935_s21  ;;  %vm491_vm12 = vcmask 523264  }
  0x27   : > { %400 = vmatpush.msra.mxu0 %v372_v1  ;;  %700 = vmatpush.msra.mxu3 %v372_v1  ;;  %v369_v4 = vld [vmem:[%s326_s11] sm:$0xff]  ;;  %v368_v6 = vld [vmem:[%s978_s2 + $0x8] sm:$0xff]  ;;  %v380_v14 = vld [vmem:[%s901_s15 + $0x38] sm:$0xff] }
  0x28   : > { %v367_v5 = vld [vmem:[%s978_s2] sm:$0xff]  ;;  %506 = vmatpush.msra.mxu1 %v380_v14  ;;  %704 = vmatpush.msra.mxu2 %v380_v14  ;;  %v379_v16 = vld [vmem:[%s901_s15 + $0x30] sm:$0xff]  ;;  %v378_v18 = vld [vmem:[%s901_s15 + $0x28] sm:$0xff]  ;;  %v525_v51 = vand.u32 127, %v524_v46 }
  0x29   : > { %401 = vmatpush.msra.mxu0 %v371_v2  ;;  %701 = vmatpush.msra.mxu3 %v371_v2  ;;  %v377_v21 = vld [vmem:[%s901_s15 + $0x20] sm:$0xff]  ;;  %v376_v24 = vld [vmem:[%s901_s15 + $0x18] sm:$0xff]  ;;  %v375_v27 = vld [vmem:[%s901_s15 + $0x10] sm:$0xff] }
  0x2a   : > { %507 = vmatpush.msra.mxu1 %v379_v16  ;;  %705 = vmatpush.msra.mxu2 %v379_v16  ;;  %v374_v30 = vld [vmem:[%s901_s15 + $0x8] sm:$0xff]  ;;  %v373_v34 = vld [vmem:[%s901_s15] sm:$0xff]  ;;  %vm943_vm10 = vcmp.eq.s32.totalorder %v525_v51, %v526_v49 }
  0x2b   : > { %402 = vmatpush.msra.mxu0 %v370_v3  ;;  %702 = vmatpush.msra.mxu3 %v370_v3  ;;  %v528_v52 = vld [vmem:[%s981_s5] sm:$0xff]  ;;  %v529_v1 = vld [vmem:[%s981_s5 + $0x8] sm:$0xff] }
  0x2c   : > { %508 = vmatpush.msra.mxu1 %v378_v18  ;;  %706 = vmatpush.msra.mxu2 %v378_v18  ;;  %v530_v60 = vsel %vm943_vm10, %v528_v52, 0.0 }
  0x2d   : > { %403 = vmatpush.msra.mxu0 %v369_v4  ;;  %703 = vmatpush.msra.mxu3 %v369_v4 }
  0x2e   : > { %687 = vmatmul.msk.f32.vlgmr.msra.gmra.mxu0 %vm381_vm1, %v367_v5  ;;  %688 = vmatmul.msk.f32.vlgmr.msra.gmra.mxu3 %vm381_vm1, %v368_v6  ;;  %v531_v6 = vsel %vm943_vm10, %v529_v1, 0.0 }
  0x2f   : > { %509 = vmatpush.msra.mxu1 %v377_v21  ;;  %707 = vmatpush.msra.mxu2 %v377_v21 }
  0x30   : > { %532 = vadd.xlane.f32.xlu0 %v530_v60 }
  0x31   : > { %510 = vmatpush.msra.mxu1 %v376_v24  ;;  %708 = vmatpush.msra.mxu2 %v376_v24 }
  0x33   : > { %511 = vmatpush.msra.mxu1 %v375_v27  ;;  %709 = vmatpush.msra.mxu2 %v375_v27 }
  0x35   : > { %512 = vmatpush.msra.mxu1 %v374_v30  ;;  %710 = vmatpush.msra.mxu2 %v374_v30 }
  0x37   : > { %513 = vmatpush.msra.mxu1 %v373_v34  ;;  %711 = vmatpush.msra.mxu2 %v373_v34  ;;  %v536_v34 = vld [vmem:[#allocation2] sm:$0xff] }
  0x38   : > { %534 = vadd.xlane.f32.xlu0 %v531_v6 }
  0xab   : > { %v912_v7 = vpop.f32.mrf.mxu0 }
  0xac   : > { %v915_v8 = vmul.f32 0.70710677, %v912_v7 }
  0xae   : > { %v415_v9 = vand.u32 2147483647, %v915_v8  ;;  %vm481_vm11 = vcmp.ge.f32.partialorder %v915_v8, 0.0  ;;  %v533_v8 = vpop.xlane.xlu0 %532 }
  0xb0   : > { %v417_v10 = vmul.f32 0.3275911, %v415_v9  ;;  %v469_v37 = vsub.f32 0.0, %v415_v9 }
  0xb1   : > { %v918_v11 = vpop.f32.mrf.mxu3 }
  0xb2   : > { %v419_v12 = vadd.f32 1.0, %v417_v10  ;;  %v921_v13 = vmul.f32 0.70710677, %v918_v11  ;;  %v471_v44 = vmul.f32 %v469_v37, %v415_v9  ;;  %v412_v30 = vmul.f32 0.5, %v918_v11 }
  0xb4   : > { %747 = vrcp.f32 %v419_v12  ;;  %v925_v15 = vand.u32 2147483647, %v921_v13  ;;  %v432_v23 = vand.u32 2147483648, %v419_v12  ;;  %vm426_vm2 = vweird.f32 %v419_v12 }
  0xb5   : > { %v430_v26 = vand.u32 2147483647, %v419_v12  ;;  %v473_v56 = vmul.f32 1.442695, %v471_v44  ;;  %vm482_vm13 = vcmp.ge.f32.partialorder %v921_v13, 0.0 }
  0xb6   : > { %v418_v17 = vmul.f32 0.3275911, %v925_v15  ;;  %v433_v29 = vor.u32 1.1754944e-38, %v432_v23  ;;  %v470_v55 = vsub.f32 0.0, %v925_v15  ;;  %v411_v23 = vmul.f32 0.5, %v912_v7 }
  0xb7   : > { %vm431_vm5 = vcmp.eq.f32.partialorder %v430_v26, 8.507059e+37 }
  0xb8   : > { %v420_v19 = vadd.f32 1.0, %v418_v17  ;;  %v472_v63 = vmul.f32 %v470_v55, %v925_v15 }
  0xba   : > { %v748_v20 = vpop.eup %747  ;;  %749 = vrcp.f32 %v420_v19  ;;  %v447_v40 = vand.u32 2147483648, %v420_v19  ;;  %v445_v42 = vand.u32 2147483647, %v420_v19  ;;  %vm441_vm7 = vweird.f32 %v420_v19 }
  0xbb   : > { %v422_v22 = vmul.f32 %v748_v20, %v419_v12  ;;  %vm427_vm3 = vweird.f32 %v748_v20  ;;  %751 = vpow2.f32 %v473_v56  ;;  %v475_v5 = vmul.f32 1.442695, %v472_v63 }
  0xbc   : > { %vm428_vm4 = vmor %vm426_vm2, %vm427_vm3  ;;  %v448_v48 = vor.u32 1.1754944e-38, %v447_v40  ;;  %vm446_vm9 = vcmp.eq.f32.partialorder %v445_v42, 8.507059e+37 }
  0xbd   : > { %v423_v25 = vsub.f32 1.0, %v422_v22  ;;  %753 = vpow2.f32 %v475_v5 }
  0xbf   : > { %v424_v28 = vmul.f32 %v748_v20, %v423_v25 }
  0xc0   : > { %v750_v31 = vpop.eup %749 }
  0xc1   : > { %v425_v32 = vadd.f32 %v748_v20, %v424_v28  ;;  %v437_v33 = vmul.f32 %v750_v31, %v420_v19  ;;  %vm442_vm6 = vweird.f32 %v750_v31  ;;  %v752_v12 = vpop.eup %751 }
  0xc2   : > { %vm443_vm8 = vmor %vm441_vm7, %vm442_vm6 }
  0xc3   : > { %v429_v35 = vsel %vm428_vm4, %v748_v20, %v425_v32  ;;  %v438_v38 = vsub.f32 1.0, %v437_v33  ;;  %v754_v21 = vpop.eup %753 }
  0xc4   : > { %v434_v36 = vsel %vm431_vm5, %v433_v29, %v429_v35 }
  0xc5   : > { %v451_v39 = vmul.f32 1.0614054, %v434_v36  ;;  %v439_v41 = vmul.f32 %v750_v31, %v438_v38  ;;  %v537_v38 = vld [vmem:[#allocation2 + $0x8] sm:$0xff] }
  0xc7   : > { %v453_v43 = vadd.f32 -1.4531521, %v451_v39  ;;  %v440_v45 = vadd.f32 %v750_v31, %v439_v41 }
  0xc9   : > { %v455_v47 = vmul.f32 %v453_v43, %v434_v36  ;;  %v444_v50 = vsel %vm443_vm8, %v750_v31, %v440_v45 }
  0xca   : > { %v449_v54 = vsel %vm446_vm9, %v448_v48, %v444_v50 }
  0xcb   : > { %v457_v53 = vadd.f32 1.4214138, %v455_v47  ;;  %v452_v57 = vmul.f32 1.0614054, %v449_v54 }
  0xcd   : > { %v459_v59 = vmul.f32 %v457_v53, %v434_v36  ;;  %v454_v61 = vadd.f32 -1.4531521, %v452_v57 }
  0xcf   : > { %v461_v62 = vadd.f32 -0.28449672, %v459_v59  ;;  %v456_v0 = vmul.f32 %v454_v61, %v449_v54 }
  0xd1   : > { %v463_v2 = vmul.f32 %v461_v62, %v434_v36  ;;  %v458_v3 = vadd.f32 1.4214138, %v456_v0 }
  0xd3   : > { %v465_v4 = vadd.f32 0.2548296, %v463_v2  ;;  %v460_v9 = vmul.f32 %v458_v3, %v449_v54 }
  0xd5   : > { %v467_v10 = vmul.f32 %v465_v4, %v434_v36  ;;  %v462_v14 = vadd.f32 -0.28449672, %v460_v9  ;;  %v535_v36 = vpop.xlane.xlu0 %534 }
  0xd7   : > { %v477_v16 = vmul.f32 %v752_v12, %v467_v10  ;;  %v464_v15 = vmul.f32 %v462_v14, %v449_v54 }
  0xd9   : > { %v479_v17 = vsub.f32 1.0, %v477_v16  ;;  %v466_v18 = vadd.f32 0.2548296, %v464_v15 }
  0xdb   : > { %v483_v19 = vsub.f32 0.0, %v479_v17  ;;  %v468_v20 = vmul.f32 %v466_v18, %v449_v54 }
  0xdd   : > { %v485_v22 = vsel %vm481_vm11, %v479_v17, %v483_v19  ;;  %v478_v25 = vmul.f32 %v754_v21, %v468_v20 }
  0xde   : > { %v487_v24 = vadd.f32 1.0, %v485_v22 }
  0xdf   : > { %v480_v27 = vsub.f32 1.0, %v478_v25 }
  0xe0   : > { %v489_v26 = vmul.f32 %v487_v24, %v411_v23 }
  0xe1   : > { %v484_v28 = vsub.f32 0.0, %v480_v27 }
  0xe2   : > { %689 = vmatmul.msk.f32.vlgmr.msra.gmra.mxu1 %vm491_vm12, %v489_v26 }
  0xe3   : > { %v486_v29 = vsel %vm482_vm13, %v480_v27, %v484_v28 }
  0xe4   : > { %v488_v31 = vadd.f32 1.0, %v486_v29 }
  0xe6   : > { %v490_v32 = vmul.f32 %v488_v31, %v412_v30 }
  0xe8   : > { %690 = vmatmul.msk.f32.vlgmr.msra.gmra.mxu2 %vm491_vm12, %v490_v32 }
 0x15f   : > { %v515_v33 = vpop.f32.mrf.mxu1 }
 0x160   : > { %v538_v35 = vmul.f32 %v533_v8, %v515_v33 }
 0x162   : > { %v540_v7 = vadd.f32 %v538_v35, %v536_v34 }
 0x164   : > { %542 = vst.msk [vmem:[#allocation2] sm:$0xff] %vm381_vm1, %v540_v7 }
 0x16b   : > { %v518_v37 = vpop.f32.mrf.mxu2 }
 0x16c   : > { %v539_v39 = vmul.f32 %v535_v36, %v518_v37 }
 0x16e   : > { %v541_v40 = vadd.f32 %v539_v39, %v537_v38 }
 0x170   : > { %543 = vst.msk [vmem:[#allocation2 + $0x8] sm:$0xff] %vm381_vm1, %v541_v40 }
 0x171 PF: > { %p544_p8 = scmp.eq.s32.totalorder %s815_s27, 4 }
 0x172   : > { %v549_v11 = vld [vmem:[#allocation2] sm:$0xff] (%p544_p8)  ;;  %vm551_vm14 = vcmask (%p544_p8), 261120  }
 0x173   : > { %548 = sbr.rel (!%p544_p8) target bundleno = 377 (0x179), region = 48  ;;  %552 = vst.msk [vmem:[#allocation6] sm:$0xff] (%p544_p8), %vm551_vm14, %v549_v11 }
 0x177   : > { %v550_v13 = vld [vmem:[#allocation2 + $0x8] sm:$0xff] (%p544_p8) }
 0x178   : > { %553 = vst.msk [vmem:[#allocation6 + $0x8] sm:$0xff] %vm551_vm14, %v550_v13 }
 0x179 PF: > { %p716_p9 = scmp.eq.s32.totalorder %s675_s0, 4  ;;  %s564_s7 = sshll.u32 %s982_s6, 4  ;;  %s565_s7 = int_to_ptr.hbm [resolvable:$true] %s564_s7 }
 0x17a   : > { %s827_s8 = smov [#allocation6]   ;;  %s828_s10 = smov 128  }
 0x17b   : > { %s562_s9 = sshll.u32 %s827_s8, 4  ;;  %s829_s27 = smov 8   ;;  %s563_s9 = int_to_ptr.vmem [resolvable:$true] %s562_s9 }
 0x17c   : > { %713 = dma.vmem_to_hbm [thread:$0]  (%p716_p9), %s563_s9, 256, %s565_s7, [#allocation7], %s828_s10, %s828_s10, %s829_s27  }
 0x17d   : > { %810 = dma.done.wait (%p716_p9), [#allocation7], 256  }
 0x17e   : > { %812 = vsyncadd (%p716_p9), [#allocation7], 4294967040 }
 0x17f PF: > { %s26_s29 = sadd.s32 1, %s823_s29   ;;  %s985_s27 = smov %s819_s28 }
 0x180   : > { %p23_p10 = scmp.ge.s32.totalorder %s26_s29, 7   ;;  %s986_s28 = smov %s988_s1 }
 0x182   :  { %25 = sbr.rel (!%p23_p10) target bundleno = 8 (0x8), region = 85 }
 0x187   :  { %581 = vsyncpa [#allocation7], 1 }
 0x188   :  { %583 = vsyncpa [#allocation7 + $0x1], 1 }

</bundles_post_ra>
